<compile_context>
chip_gen: v6e
topology: v6e:2x2x1
jax: 0.10.0
libtpu: 0.0.40
codegen_flags: <defaults>
</compile_context>

<pallas_src>
import jax
import jax.numpy as jnp
from jax.experimental import pallas as pl
from jax.experimental.pallas import tpu as pltpu

LANE = 128


def _round_up(x, m):
    return (x + m - 1) // m * m


def mlp_kernel(x_ref, w1_ref, b1_ref, w2_ref, b2_ref, o_ref):
    # x tile: (block_m, Fp) bf16 ; weights bf16 ; biases f32.
    x = x_ref[...]
    # hidden = ReLU(x @ W1 + b1)  -- MXU in bf16, accumulate f32, elementwise in f32.
    h = jnp.dot(x, w1_ref[...], preferred_element_type=jnp.float32)
    h = jnp.maximum(h + b1_ref[...], 0.0)
    # out = h @ W2 + b2
    y = jnp.dot(h.astype(jnp.bfloat16), w2_ref[...],
                preferred_element_type=jnp.float32)
    y = y + b2_ref[...]
    # F.normalize(y, p=2, dim=1): y / max(||y||_2, 1e-12)
    sumsq = jnp.sum(y * y, axis=1, keepdims=True)
    norm = jnp.sqrt(sumsq)
    inv = pl.reciprocal(jnp.maximum(norm, 1e-12), approx=True)   # EUP, ~free
    o_ref[...] = (y * inv).astype(o_ref.dtype)


def _pad2(a, rows, cols, dtype):
    a = a.astype(dtype)
    return jnp.pad(a, ((0, rows - a.shape[0]), (0, cols - a.shape[1])))


def mlp_forward(x, w1, b1, w2, b2, *, block_m=128):
    B, F = x.shape
    Fw, H = w1.shape
    Hw, E = w2.shape
    assert Fw == F and Hw == H

    # Lane/MXU-aligned padded sizes (exact math: zero pads contribute nothing).
    Fp = _round_up(F, LANE)
    Hp = _round_up(H, LANE)
    Ep = _round_up(E, LANE)

    # Batch tile: multiple of 8 (sublanes), clamped to the (padded) batch.
    block_m = _round_up(max(8, min(block_m, _round_up(B, 8))), 8)
    Bp = _round_up(B, block_m)
    grid_m = Bp // block_m

    # bf16 MXU operands; biases stay f32.
    xb = _pad2(x, Bp, Fp, jnp.bfloat16)
    w1b = _pad2(w1, Fp, Hp, jnp.bfloat16)
    w2b = _pad2(w2, Hp, Ep, jnp.bfloat16)
    b1f = _pad2(b1.reshape(1, H), 1, Hp, jnp.float32)
    b2f = _pad2(b2.reshape(1, E), 1, Ep, jnp.float32)

    out_padded = pl.pallas_call(
        mlp_kernel,
        out_shape=jax.ShapeDtypeStruct((Bp, Ep), jnp.float32),
        grid_spec=pltpu.PrefetchScalarGridSpec(
            num_scalar_prefetch=0,
            grid=(grid_m,),
            in_specs=[
                pl.BlockSpec((block_m, Fp), lambda i: (i, 0)),   # x tile (streams)
                pl.BlockSpec((Fp, Hp), lambda i: (0, 0)),        # W1 (grid-invariant)
                pl.BlockSpec((1, Hp), lambda i: (0, 0)),         # b1
                pl.BlockSpec((Hp, Ep), lambda i: (0, 0)),        # W2 (grid-invariant)
                pl.BlockSpec((1, Ep), lambda i: (0, 0)),         # b2
            ],
            out_specs=pl.BlockSpec((block_m, Ep), lambda i: (i, 0)),
        ),
        compiler_params=pltpu.CompilerParams(
            dimension_semantics=("parallel",),
            vmem_limit_bytes=64 * 1024 * 1024,
        ),
    )(xb, w1b, b1f, w2b, b2f)

    return out_padded[:B, :E]


def init_params(key, feature_size, hidden_size, embedding_size):
    # nn.init.kaiming_normal_(weight, a=0, mode='fan_out') on nn.Linear:
    #   fan_out = out_features, gain = sqrt(2)  ->  std = sqrt(2 / out_features)
    # biases are zero (nn.init.constant_(bias, 0.0)).
    k1, k2 = jax.random.split(key)
    std1 = (2.0 / hidden_size) ** 0.5
    std2 = (2.0 / embedding_size) ** 0.5
    # Stored transposed relative to torch: (in_features, out_features)
    w1 = std1 * jax.random.normal(k1, (feature_size, hidden_size), dtype=jnp.float32)
    b1 = jnp.zeros((1, hidden_size), dtype=jnp.float32)
    w2 = std2 * jax.random.normal(k2, (hidden_size, embedding_size), dtype=jnp.float32)
    b2 = jnp.zeros((1, embedding_size), dtype=jnp.float32)
    return w1, b1, w2, b2


if __name__ == "__main__":
    # Deliberately non-aligned small shapes to exercise the padding + multi-step grid:
    # B=200 -> padded 256 (grid of 2 tiles of 128), F=96->128, H=192->256, E=64->128.
    batch, feature_size, hidden_size, embedding_size = 200, 96, 192, 64

    key = jax.random.PRNGKey(0)
    kx, kp = jax.random.split(key)
    x = jax.random.normal(kx, (batch, feature_size), dtype=jnp.float32)
    w1, b1, w2, b2 = init_params(kp, feature_size, hidden_size, embedding_size)

    out = mlp_forward(x, w1, b1, w2, b2, block_m=128)
    out = jax.block_until_ready(out)

    # Pure f32 reference of the module's math (kernel uses bf16 MXU inputs, so use a
    # correspondingly looser tolerance).
    h_ref = jnp.maximum(x @ w1 + b1, 0.0)
    y_ref = h_ref @ w2 + b2
    ref = y_ref / jnp.maximum(
        jnp.sqrt(jnp.sum(y_ref * y_ref, axis=1, keepdims=True)), 1e-12
    )

    assert out.shape == (batch, embedding_size)
    assert jnp.allclose(out, ref, atol=2e-2, rtol=2e-2), (
        "mismatch vs reference, max abs err = "
        + str(float(jnp.max(jnp.abs(out - ref))))
    )

    print("KERNEL_OK")
</pallas_src>

<mosaic_0001>
module attributes {stable_mosaic.version = 11 : i64} {
  func.func @mlp_kernel(%arg0: i32, %arg1: memref<128x128xbf16, #tpu.memory_space<vmem>>, %arg2: memref<128x256xbf16, #tpu.memory_space<vmem>>, %arg3: memref<1x256xf32, #tpu.memory_space<vmem>>, %arg4: memref<256x128xbf16, #tpu.memory_space<vmem>>, %arg5: memref<1x128xf32, #tpu.memory_space<vmem>>, %arg6: memref<128x128xf32, #tpu.memory_space<vmem>>) attributes {dimension_semantics = [#tpu.dimension_semantics<parallel>], iteration_bounds = array<i64: 2>, scalar_prefetch = 0 : i64, scratch_operands = 0 : i64, tpu.core_type = #tpu.core_type<tc>, window_params = [{transform_indices = @transform_0, window_bounds = array<i64: 128, 128>}, {pipeline_mode = #tpu.pipeline_mode<synchronous>, transform_indices = @transform_1, window_bounds = array<i64: 128, 256>}, {pipeline_mode = #tpu.pipeline_mode<synchronous>, transform_indices = @transform_2, window_bounds = array<i64: 1, 256>}, {pipeline_mode = #tpu.pipeline_mode<synchronous>, transform_indices = @transform_3, window_bounds = array<i64: 256, 128>}, {pipeline_mode = #tpu.pipeline_mode<synchronous>, transform_indices = @transform_4, window_bounds = array<i64: 1, 128>}, {transform_indices = @transform_5, window_bounds = array<i64: 128, 128>}]} {
    %c0 = arith.constant 0 : index
    %c0_0 = arith.constant 0 : index
    %0 = vector.load %arg1[%c0, %c0_0] : memref<128x128xbf16, #tpu.memory_space<vmem>>, vector<128x128xbf16>
    %c0_1 = arith.constant 0 : index
    %c0_2 = arith.constant 0 : index
    %1 = vector.load %arg2[%c0_1, %c0_2] : memref<128x256xbf16, #tpu.memory_space<vmem>>, vector<128x256xbf16>
    %cst = arith.constant dense<0.000000e+00> : vector<128x256xf32>
    %2 = tpu.matmul %0, %1, %cst {dimension_numbers = #tpu.dot_dimension_numbers<[1], [0], [0], [1], [0, 0, 1, 1], [], []>} : vector<128x128xbf16>, vector<128x256xbf16>, vector<128x256xf32> -> vector<128x256xf32>
    %c0_3 = arith.constant 0 : index
    %c0_4 = arith.constant 0 : index
    %3 = vector.load %arg3[%c0_3, %c0_4] : memref<1x256xf32, #tpu.memory_space<vmem>>, vector<1x256xf32>
    %4 = vector.broadcast %3 : vector<1x256xf32> to vector<128x256xf32>
    %5 = arith.addf %2, %4 : vector<128x256xf32>
    %cst_5 = arith.constant 0.000000e+00 : f32
    %6 = vector.broadcast %cst_5 : f32 to vector<128x256xf32>
    %7 = arith.maximumf %5, %6 : vector<128x256xf32>
    %8 = arith.truncf %7 : vector<128x256xf32> to vector<128x256xbf16>
    %c0_6 = arith.constant 0 : index
    %c0_7 = arith.constant 0 : index
    %9 = vector.load %arg4[%c0_6, %c0_7] : memref<256x128xbf16, #tpu.memory_space<vmem>>, vector<256x128xbf16>
    %cst_8 = arith.constant dense<0.000000e+00> : vector<128x128xf32>
    %10 = tpu.matmul %8, %9, %cst_8 {dimension_numbers = #tpu.dot_dimension_numbers<[1], [0], [0], [1], [0, 0, 1, 1], [], []>} : vector<128x256xbf16>, vector<256x128xbf16>, vector<128x128xf32> -> vector<128x128xf32>
    %c0_9 = arith.constant 0 : index
    %c0_10 = arith.constant 0 : index
    %11 = vector.load %arg5[%c0_9, %c0_10] : memref<1x128xf32, #tpu.memory_space<vmem>>, vector<1x128xf32>
    %12 = vector.broadcast %11 : vector<1x128xf32> to vector<128x128xf32>
    %13 = arith.addf %10, %12 : vector<128x128xf32>
    %14 = arith.mulf %13, %13 : vector<128x128xf32>
    %cst_11 = arith.constant dense<0.000000e+00> : vector<128xf32>
    %15 = vector.multi_reduction <add>, %14, %cst_11 [1] : vector<128x128xf32> to vector<128xf32>
    %16 = vector.shape_cast %15 : vector<128xf32> to vector<128x1xf32>
    %17 = math.sqrt %16 : vector<128x1xf32>
    %cst_12 = arith.constant 9.99999996E-13 : f32
    %18 = vector.broadcast %cst_12 : f32 to vector<128x1xf32>
    %19 = arith.maximumf %17, %18 : vector<128x1xf32>
    %20 = tpu.reciprocal %19 {approx = true} : vector<128x1xf32> -> vector<128x1xf32>
    %21 = vector.broadcast %20 : vector<128x1xf32> to vector<128x128xf32>
    %22 = arith.mulf %13, %21 : vector<128x128xf32>
    %c0_13 = arith.constant 0 : index
    %c0_14 = arith.constant 0 : index
    %23 = vector.load %arg6[%c0_13, %c0_14] : memref<128x128xf32, #tpu.memory_space<vmem>>, vector<128x128xf32>
    tpu.vector_store %arg6[%c0_13, %c0_14], %22 {strides = array<i32>} : memref<128x128xf32, #tpu.memory_space<vmem>>, vector<128x128xf32>,
    return
  }
  func.func @transform_0(%arg0: i32) -> (i32, i32) {
    %c0_i32 = arith.constant 0 : i32
    %c0_i32_0 = arith.constant 0 : i32
    return %arg0, %c0_i32 : i32, i32
  }
  func.func @transform_1(%arg0: i32) -> (i32, i32) {
    %c0_i32 = arith.constant 0 : i32
    %c0_i32_0 = arith.constant 0 : i32
    %c0_i32_1 = arith.constant 0 : i32
    return %c0_i32, %c0_i32_0 : i32, i32
  }
  func.func @transform_2(%arg0: i32) -> (i32, i32) {
    %c0_i32 = arith.constant 0 : i32
    %c0_i32_0 = arith.constant 0 : i32
    %c0_i32_1 = arith.constant 0 : i32
    return %c0_i32, %c0_i32_0 : i32, i32
  }
  func.func @transform_3(%arg0: i32) -> (i32, i32) {
    %c0_i32 = arith.constant 0 : i32
    %c0_i32_0 = arith.constant 0 : i32
    %c0_i32_1 = arith.constant 0 : i32
    return %c0_i32, %c0_i32_0 : i32, i32
  }
  func.func @transform_4(%arg0: i32) -> (i32, i32) {
    %c0_i32 = arith.constant 0 : i32
    %c0_i32_0 = arith.constant 0 : i32
    %c0_i32_1 = arith.constant 0 : i32
    return %c0_i32, %c0_i32_0 : i32, i32
  }
  func.func @transform_5(%arg0: i32) -> (i32, i32) {
    %c0_i32 = arith.constant 0 : i32
    %c0_i32_0 = arith.constant 0 : i32
    return %arg0, %c0_i32 : i32, i32
  }
}

</mosaic_0001>

<bundles_post_ra>
// kernel: tpu_custom_call.1
= control target key start
LH: loop header
LB: loop body
LE: loop exit
PB: predicated region body
PF: predicated region fallthrough
CT: control target
= control target key end

     0   :  { %10 = vsyncpa [#allocation3], 0  ;;  %s2100_s0 = inlined_call_operand.hbm [shape: bf16[256,128], index: 0, kind: input, shape index: {}]   ;;  %s2101_s1 = inlined_call_operand.hbm [shape: bf16[128,256], index: 1, kind: input, shape index: {}]   ;;  %s2102_s2 = inlined_call_operand.vmem [shape: f32[1,256], index: 2, kind: input, shape index: {}]   ;;  %s2103_s3 = inlined_call_operand.hbm [shape: bf16[256,128], index: 3, kind: input, shape index: {}]   ;;  %s2104_s4 = inlined_call_operand.vmem [shape: f32[1,128], index: 4, kind: input, shape index: {}]   ;;  %s2105_s5 = inlined_call_operand.hbm [shape: f32[256,128], index: 5, kind: output, shape index: {}]  }
   0x1   :  { %12 = vsyncpa [#allocation3 + $0x1], 0 }
   0x2   :  { %13 = vsyncpa [#allocation6], 0 }
   0x3   :  { %14 = vsyncpa [#allocation4], 0 }
   0x4   :  { %16 = vsyncpa [#allocation4 + $0x1], 0  ;;  %s1672_s18 = smov 0   ;;  %s1674_s19 = smov 0  }
   0x5   :  { %s1676_s20 = smov 0   ;;  %s1678_s21 = smov 0  }
   0x6 LB: > { %s1693_s22 = sadd.s32 4294967295, %s1629_s21   ;;  %s1170_s23 = sadd.s32 4294967294, %s1629_s21   ;;  %s1629_s21 = sphi %s1678_s21, %s2129_s21   ;;  %s1625_s20 = sphi %s1676_s20, %s2128_s20   ;;  %s1621_s19 = sphi %s1674_s19, %s2127_s19   ;;  %s1617_s18 = sphi %s1672_s18, %s2126_s18  }
   0x7   : > { %p42_p0 = scmp.ne.s32.totalorder %s1621_s19, %s1617_s18  ;;  %p2106_p1 = scmp.eq.s32.totalorder %s1693_s22, 0 }
   0x8   : > { %p156_p3 = scmp.eq.s32.totalorder %s1170_s23, 1  ;;  %p1171_p5 = scmp.ge.s32.totalorder %s1629_s21, 1 }
   0x9   : > { %p1702_p4 = por %p2106_p1, %p42_p0  ;;  %p163_p7 = scmp.lt.s32.totalorder %s1629_s21, 3 }
   0xa   : > { %p1707_p6 = por %p156_p3, %p42_p0  ;;  %s1631_s27 = smov [#allocation5]  }
   0xb   : > { %s2111_s24 = scalar_select %p1702_p4, 1, 0 }
   0xc   : > { %s2112_s25 = scalar_select %p1707_p6, 1, 0 }
   0xd   : > { %p1712_p8 = pnand %p1171_p5, %p163_p7  ;;  %s175_s28 = sshll.u32 %s1631_s27, 4  ;;  %s176_s28 = int_to_ptr.vmem [resolvable:$true] %s175_s28 }
   0xe   : > { %s1632_s30 = smov [#allocation7]   ;;  %s1492_s7 = scalar_lea.vmem %s176_s28, 2048 }
   0xf   : > { %s2113_s26 = scalar_select %p1712_p8, 1, 0 }
  0x10   : > { %p1307_p9 = pneg %p1712_p8  ;;  %s191_s6 = sshll.u32 %s1632_s30, 4  ;;  %s192_s6 = int_to_ptr.vmem [resolvable:$true] %s191_s6 }
  0x11   : > { %p1493_p13 = scmp.ne.s32.totalorder %s176_s28, %s1492_s7  ;;  %p1500_p5 = scmp.lt.s32.totalorder %s176_s28, %s176_s28 }
  0x12   : > { %p1721_p11 = pnand %p1307_p9, %p2106_p1  ;;  %p1501_p7 = scmp.lt.s32.totalorder %s1492_s7, %s1492_s7 }
  0x14   : > { %p1483_p12 = pneg %p1721_p11  ;;  %p1502_p10 = por %p1501_p7, %p1500_p5 }
  0x16   : > { %p1495_p0 = pnand %p1493_p13, %p1483_p12 }
  0x18   : > { %p1496_p3 = pneg %p1495_p0 }
  0x1a   : > { %p1503_p9 = pnand %p1502_p10, %p1496_p3 }
  0x1c   : > { %1506 = shalt.err (!%p1503_p9)
}
  0x1d   : > { %s1633_s8 = smov 128   ;;  %s1634_s9 = smov 8  }
  0x1e   : > { %1310 = dma.hbm_to_vmem [thread:$0]  (!%p1721_p11), %s2101_s1, 2048, %s176_s28, [#allocation6], %s1633_s8, %s1633_s8, %s1634_s9  }
  0x1f   : > { %s1518_s12 = scalar_lea.vmem %s192_s6, 2048  ;;  %p1526_p2 = scmp.lt.s32.totalorder %s192_s6, %s192_s6 }
  0x20   : > { %p1519_p1 = scmp.ne.s32.totalorder %s192_s6, %s1518_s12  ;;  %p1527_p6 = scmp.lt.s32.totalorder %s1518_s12, %s1518_s12 }
  0x22   : > { %p1521_p13 = pnand %p1519_p1, %p1483_p12  ;;  %p1528_p5 = por %p1527_p6, %p1526_p2 }
  0x24   : > { %p1522_p0 = pneg %p1521_p13 }
  0x26   : > { %p1529_p10 = pnand %p1528_p5, %p1522_p0 }
  0x28   : > { %1532 = shalt.err (!%p1529_p10)
}
  0x29   : > { %s2107_s13 = smov 64   ;;  %s1636_s14 = smov 4  }
  0x2a   : > { %1313 = dma.hbm_to_vmem [thread:$0]  (!%p1721_p11), %s2103_s3, 2048, %s192_s6, [#allocation6], %s2107_s13, %s2107_s13, %s1636_s14  }
  0x2b   : > { %s1747_s17 = sadd.s32 1, %s1629_s21   ;;  %s29_s27 = sadd.s32 1, %s1625_s20 }
  0x2c   : > { %s26_s23 = ssub.s32 %s1629_s21, %s1747_s17  ;;  %p36_p2 = scmp.ne.s32.totalorder %s1625_s20, %s1621_s19 }
  0x2d   : > { %p27_p1 = scmp.eq.s32.totalorder %s26_s23, 0  ;;  %p37_p6 = scmp.eq.s32.totalorder %s1629_s21, 0 }
  0x2e   : > { %p2115_p3 = scmp.eq.s32.totalorder %s1693_s22, 1  ;;  %p1324_p9 = scmp.lt.s32.totalorder %s1629_s21, 2 }
  0x2f   : > { %s1756_s28 = scalar_select %p27_p1, %s1625_s20, %s29_s27  }
  0x30   : > { %p38_p12 = por %p37_p6, %p36_p2  ;;  %p1760_p7 = por %p2115_p3, %p36_p2 }
  0x31   : > { %s208_s30 = sand.u32 1, %s1625_s20   ;;  %s1229_s6 = sshll.u32 %s1629_s21, 10 }
  0x32   : > { %s2116_s29 = scalar_select %p1760_p7, 1, 0 }
  0x33   : > { %s1175_s7 = sshll.u32 %s208_s30, 6  ;;  %s1770_s10 = scalar_lea.hbm %s2100_s0, %s1229_s6 }
  0x34   : > { %s212_s11 = scalar_lea.vmem [#allocation2], %s1175_s7  ;;  %p1774_p11 = pnand %p1324_p9, %p38_p12 }
  0x35   : > { %s219_s12 = sshll.u32 %s212_s11, 4  ;;  %s1778_s16 = scalar_lea.sflag [#allocation3], %s208_s30  ;;  %s1772_s12 = int_to_ptr.vmem [resolvable:$true] %s219_s12 }
  0x36   : > { %s1533_s23 = scalar_lea.hbm %s1770_s10, 1024  ;;  %p1535_p0 = pneg %p1774_p11 }
  0x37   : > { %p1534_p13 = scmp.ne.s32.totalorder %s1770_s10, %s1533_s23  ;;  %s1538_s7 = scalar_lea.hbm %s2100_s0, 2048 }
  0x38   : > { %p1539_p1 = scmp.lt.s32.totalorder %s1770_s10, %s2100_s0  ;;  %p1540_p2 = scmp.lt.s32.totalorder %s1538_s7, %s1533_s23 }
  0x39   : > { %p1536_p5 = pnand %p1535_p0, %p1534_p13 }
  0x3a   : > { %p1541_p6 = por %p1540_p2, %p1539_p1 }
  0x3b   : > { %p1537_p10 = pneg %p1536_p5 }
  0x3d   : > { %p1542_p12 = pnand %p1541_p6, %p1537_p10 }
  0x3f   : > { %1545 = shalt.err (!%p1542_p12)
}
  0x40   : > { %s1546_s30 = scalar_lea.vmem %s1772_s12, 1024  ;;  %s1637_s11 = smov [#allocation2]  }
  0x41   : > { %p1547_p3 = scmp.ne.s32.totalorder %s1772_s12, %s1546_s30  ;;  %s1551_s13 = sshll.u32 %s1637_s11, 4  ;;  %s1552_s13 = int_to_ptr.vmem [resolvable:$false] %s1551_s13 }
  0x42   : > { %s1553_s27 = scalar_lea.vmem %s1552_s13, 2048  ;;  %p1554_p5 = scmp.lt.s32.totalorder %s1772_s12, %s1552_s13 }
  0x43   : > { %p1549_p9 = pnand %p1547_p3, %p1535_p0  ;;  %p1555_p7 = scmp.lt.s32.totalorder %s1553_s27, %s1546_s30 }
  0x45   : > { %p1550_p13 = pneg %p1549_p9  ;;  %p1556_p4 = por %p1555_p7, %p1554_p5 }
  0x47   : > { %p1557_p8 = pnand %p1556_p4, %p1550_p13 }
  0x49   : > { %1560 = shalt.err (!%p1557_p8)
}
  0x4a   : > { %s2118_s23 = smov 64   ;;  %p2119_p0 = scmp.ne.s32.totalorder %s2113_s26, 0 }
  0x4b   : > { %1317 = dma.hbm_to_vmem [thread:$0]  (!%p1774_p11), %s1770_s10, 1024, %s1772_s12, %s1778_s16, %s2118_s23, %s2118_s23, %s1636_s14  }
  0x4c   : > { %231 = sbr.rel (%p2119_p0) target bundleno = 774 (0x306), region = 40  ;;  %s1805_s6 = sand.u32 (!%p2119_p0), 1, %s1621_s19  }
  0x4d   : > { %s1179_s13 = sshll.u32 (!%p2119_p0), %s1805_s6, 6  ;;  %s234_s7 = scalar_lea.sflag (!%p2119_p0), [#allocation3], %s1805_s6 }
  0x4e   : > { %s1809_s8 = scalar_lea.vmem (!%p2119_p0), [#allocation2], %s1179_s13  ;;  %p2120_p4 = scmp.ne.s32.totalorder (!%p2119_p0), %s2111_s24, 0 }
  0x51   : > { %1604 = dma.done.wait (%p2120_p4), %s234_s7, 1024  }
  0x52   : > { %1606 = vsyncadd (%p2120_p4), %s234_s7, 4294966272  ;;  %p2121_p8 = scmp.eq.s32.totalorder %s1693_s22, 0 }
  0x54   : > { %1608 = dma.done.wait (%p2121_p8), [#allocation6], 4096   ;;  %p2122_p7 = pmov %p2121_p8 }
  0x55   : > { %v1638_v0 = vmov 0   ;;  %v1369_v1 = vld [vmem:[#allocation5 + $0x74] ss:$8 sps:$4 sm:$0xff]   ;;  %v1371_v2 = vld [vmem:[#allocation5 + $0x70] ss:$8 sps:$4 sm:$0xff]   ;;  %v1405_v19 = vld [vmem:[#allocation7 + $0x68] sm:$0xff]   ;;  %v309_v41 = vlaneseq }
  0x56   : > { %1610 = vsyncadd (%p2122_p7), [#allocation6], 4294963200  ;;  %479 = vmatprep.mubr.bf16.mxu0 %v1638_v0  ;;  %447 = vmatprep.subr.bf16.mxu0 %v1369_v1  ;;  %v1372_v3 = vld [vmem:[#allocation5 + $0x64] ss:$8 sps:$4 sm:$0xff]   ;;  %v1374_v4 = vld [vmem:[#allocation5 + $0x60] ss:$8 sps:$4 sm:$0xff]  }
  0x57   : > { %448 = vmatpush1.bf16.msra.mxu0 %v1371_v2  ;;  %v1375_v5 = vld [vmem:[#allocation5 + $0x54] ss:$8 sps:$4 sm:$0xff]   ;;  %v1377_v6 = vld [vmem:[#allocation5 + $0x50] ss:$8 sps:$4 sm:$0xff]   ;;  %v1378_v7 = vld [vmem:[#allocation5 + $0x44] ss:$8 sps:$4 sm:$0xff]  }
  0x58   : > { %449 = vmatprep.subr.bf16.mxu0 %v1372_v3  ;;  %v1380_v8 = vld [vmem:[#allocation5 + $0x40] ss:$8 sps:$4 sm:$0xff]   ;;  %v1381_v9 = vld [vmem:[#allocation5 + $0x34] ss:$8 sps:$4 sm:$0xff]   ;;  %v1383_v10 = vld [vmem:[#allocation5 + $0x30] ss:$8 sps:$4 sm:$0xff]  }
  0x59   : > { %v1384_v11 = vld [vmem:[#allocation5 + $0x24] ss:$8 sps:$4 sm:$0xff]   ;;  %v1386_v12 = vld [vmem:[#allocation5 + $0x20] ss:$8 sps:$4 sm:$0xff]   ;;  %v1387_v13 = vld [vmem:[#allocation5 + $0x14] ss:$8 sps:$4 sm:$0xff]  }
  0x5a   : > { %v1401_v14 = vld [vmem:[#allocation7 + $0x78] sm:$0xff]   ;;  %v1403_v17 = vld [vmem:[#allocation7 + $0x70] sm:$0xff]   ;;  %v1390_v20 = vld [vmem:[#allocation5 + $0x4] ss:$8 sps:$4 sm:$0xff]   ;;  %v310_v42 = vshrl.u32 %v309_v41, 7  ;;  %s1182_s12 = sshll.u32 %s1805_s6, 7 }
  0x5b   : > { %450 = vmatpush1.bf16.msra.mxu0 %v1374_v4  ;;  %v1402_v15 = vld [vmem:[#allocation7 + $0x38] sm:$0xff]   ;;  %1231 = vmatprep.subr.bf16.mxu1 %v1401_v14  ;;  %v1404_v18 = vld [vmem:[#allocation7 + $0x30] sm:$0xff]   ;;  %v1392_v21 = vld [vmem:[#allocation5] ss:$8 sps:$4 sm:$0xff]   ;;  %s1969_s15 = scalar_lea.vmem [#allocation8], %s1182_s12  ;;  %s1230_s16 = sshll.u32 %s1693_s22, 11 }
  0x5c   : > { %451 = vmatprep.subr.bf16.mxu0 %v1375_v5  ;;  %v1389_v16 = vld [vmem:[#allocation5 + $0x10] ss:$8 sps:$4 sm:$0xff]   ;;  %1232 = vmatpush3.bf16.msra.mxu1 %v1402_v15  ;;  %v1406_v22 = vld [vmem:[#allocation7 + $0x28] sm:$0xff]   ;;  %v1407_v23 = vld [vmem:[#allocation7 + $0x60] sm:$0xff]   ;;  %v315_v43 = vsub.s32 1, %v310_v42  ;;  %v311_v44 = vsub.s32 0, %v310_v42  ;;  %s2053_s27 = scalar_lea.hbm %s2105_s5, %s1230_s16 }
  0x5d   : > { %1233 = vmatprep.subr.bf16.mxu1 %v1403_v17  ;;  %v1393_v24 = vld [vmem:[%s1809_s8] sm:$0xff]   ;;  %v1409_v26 = vld [vmem:[#allocation7 + $0x58] sm:$0xff]   ;;  %v1394_v28 = vld [vmem:[%s1809_s8 + $0x8] sm:$0xff]   ;;  %s1078_s9 = sshll.u32 %s1969_s15, 4  ;;  %s1065_s23 = scalar_lea.sflag [#allocation4], %s1805_s6  ;;  %s2055_s9 = int_to_ptr.vmem [resolvable:$true] %s1078_s9 }
  0x5e   : > { %v1408_v25 = vld [vmem:[#allocation7 + $0x20] sm:$0xff]   ;;  %v1410_v27 = vld [vmem:[#allocation7 + $0x18] sm:$0xff]   ;;  %v1395_v29 = vld [vmem:[%s1809_s8 + $0x10] sm:$0xff]   ;;  %s1561_s13 = scalar_lea.vmem %s2055_s9, 2048  ;;  %p2123_p10 = scmp.ne.s32.totalorder %s2116_s29, 0 }
  0x5f   : > { %452 = vmatpush1.bf16.msra.mxu0 %v1377_v6  ;;  %v1396_v30 = vld [vmem:[%s1809_s8 + $0x18] sm:$0xff]   ;;  %v1397_v31 = vld [vmem:[%s1809_s8 + $0x20] sm:$0xff]   ;;  %v1398_v32 = vld [vmem:[%s1809_s8 + $0x28] sm:$0xff]   ;;  %p1562_p11 = scmp.ne.s32.totalorder %s2055_s9, %s1561_s13  ;;  %s1639_s22 = smov [#allocation8]  }
  0x60   : > { %453 = vmatprep.subr.bf16.mxu0 %v1378_v7  ;;  %1234 = vmatpush3.bf16.msra.mxu1 %v1404_v18  ;;  %v1399_v33 = vld [vmem:[%s1809_s8 + $0x30] sm:$0xff]   ;;  %v1400_v34 = vld [vmem:[%s1809_s8 + $0x38] sm:$0xff]   ;;  %v1413_v37 = vld [vmem:[#allocation7 + $0x48] sm:$0xff]   ;;  %s1565_s7 = sshll.u32 %s1639_s22, 4  ;;  %s1566_s7 = int_to_ptr.vmem [resolvable:$false] %s1565_s7 }
  0x61   : > { %1235 = vmatprep.subr.bf16.mxu1 %v1405_v19  ;;  %v1411_v35 = vld [vmem:[#allocation7 + $0x50] sm:$0xff]   ;;  %v1414_v38 = vld [vmem:[#allocation7 + $0x8] sm:$0xff]   ;;  %v1415_v39 = vld [vmem:[#allocation7 + $0x40] sm:$0xff]   ;;  %p1563_p1 = pnand %p1562_p11, %p2123_p10  ;;  %s1567_s8 = scalar_lea.vmem %s1566_s7, 4096 }
  0x62   : > { %v1412_v36 = vld [vmem:[#allocation7 + $0x10] sm:$0xff]   ;;  %v1416_v40 = vld [vmem:[#allocation7] sm:$0xff]   ;;  %p1568_p6 = scmp.lt.s32.totalorder %s2055_s9, %s1566_s7  ;;  %p1569_p12 = scmp.lt.s32.totalorder %s1567_s8, %s1561_s13 }
  0x63   : > { %454 = vmatpush1.bf16.msra.mxu0 %v1380_v8  ;;  %v307_v45 = vld [vmem:[%s2102_s2] sm:$0x3]  ;;  %p1564_p2 = pneg %p1563_p1 }
  0x64   : > { %455 = vmatprep.subr.bf16.mxu0 %v1381_v9  ;;  %1236 = vmatpush3.bf16.msra.mxu1 %v1406_v22  ;;  %v1838_v47 = vrot.slane %v307_v45, %v315_v43  ;;  %v1840_v48 = vrot.slane %v307_v45, %v311_v44  ;;  %p1570_p3 = por %p1569_p12, %p1568_p6 }
  0x65   : > { %1237 = vmatprep.subr.bf16.mxu1 %v1407_v23 }
  0x66   : > { %p1571_p9 = pnand %p1570_p3, %p1564_p2 }
  0x67   : > { %456 = vmatpush1.bf16.msra.mxu0 %v1383_v10 }
  0x68   : > { %457 = vmatprep.subr.bf16.mxu0 %v1384_v11  ;;  %1238 = vmatpush3.bf16.msra.mxu1 %v1408_v25 }
  0x69   : > { %1239 = vmatprep.subr.bf16.mxu1 %v1409_v26 }
  0x6b   : > { %458 = vmatpush1.bf16.msra.mxu0 %v1386_v12 }
  0x6c   : > { %459 = vmatprep.subr.bf16.mxu0 %v1387_v13  ;;  %1240 = vmatpush3.bf16.msra.mxu1 %v1410_v27 }
  0x6d   : > { %1241 = vmatprep.subr.bf16.mxu1 %v1411_v35 }
  0x6f   : > { %460 = vmatpush1.bf16.msra.mxu0 %v1389_v16 }
  0x70   : > { %461 = vmatprep.subr.bf16.mxu0 %v1390_v20  ;;  %1242 = vmatpush3.bf16.msra.mxu1 %v1412_v36 }
  0x71   : > { %1243 = vmatprep.subr.bf16.mxu1 %v1413_v37 }
  0x73   : > { %462 = vmatpush1.bf16.msra.mxu0 %v1392_v21 }
  0x74   : > { %1244 = vmatpush3.bf16.msra.mxu1 %v1414_v38 }
  0x75   : > { %1245 = vmatprep.subr.bf16.mxu1 %v1415_v39 }
  0x76   : > { %480 = vmatmul.mubr.bf16.vlgmr.msra.gmra.mxu0 %v1393_v24 }
  0x77   : > { %489 = vmatprep.mubr.bf16.mxu0 %v1638_v0 }
  0x78   : > { %1246 = vmatpush3.bf16.msra.mxu1 %v1416_v40 }
  0x7e   : > { %490 = vmatmul.mubr.bf16.gmra.mxu0 %v1394_v28 }
  0x7f   : > { %499 = vmatprep.mubr.bf16.mxu0 %v1638_v0 }
  0x86   : > { %500 = vmatmul.mubr.bf16.gmra.mxu0 %v1395_v29 }
  0x87   : > { %509 = vmatprep.mubr.bf16.mxu0 %v1638_v0 }
  0x8e   : > { %510 = vmatmul.mubr.bf16.gmra.mxu0 %v1396_v30 }
  0x8f   : > { %519 = vmatprep.mubr.bf16.mxu0 %v1638_v0 }
  0x96   : > { %520 = vmatmul.mubr.bf16.gmra.mxu0 %v1397_v31 }
  0x97   : > { %529 = vmatprep.mubr.bf16.mxu0 %v1638_v0 }
  0x9e   : > { %530 = vmatmul.mubr.bf16.gmra.mxu0 %v1398_v32 }
  0x9f   : > { %539 = vmatprep.mubr.bf16.mxu0 %v1638_v0 }
  0xa6   : > { %540 = vmatmul.mubr.bf16.gmra.mxu0 %v1399_v33 }
  0xa7   : > { %549 = vmatprep.mubr.bf16.mxu0 %v1638_v0 }
  0xae   : > { %550 = vmatmul.mubr.bf16.gmra.mxu0 %v1400_v34 }
 0x136   : > { %v481_v46 = vpop.f32.mrf.mxu0 }
 0x137   : > { %v482_v53 = vadd.f32 %v481_v46, %v1840_v48 }
 0x138   : > { %v483_v49 = vpop.f32.mrf.mxu0 }
 0x139   : > { %v484_v51 = vadd.f32 %v483_v49, %v1838_v47  ;;  %v560_v60 = vmax.f32 %v482_v53, 0.0 }
 0x13a   : > { %v485_v50 = vpop.f32.mrf.mxu0 }
 0x13b   : > { %v486_v52 = vadd.f32 %v485_v50, %v1840_v48  ;;  %v561_v58 = vmax.f32 %v484_v51, 0.0 }
 0x13c   : > { %v487_v54 = vpop.f32.mrf.mxu0 }
 0x13d   : > { %v488_v55 = vadd.f32 %v487_v54, %v1838_v47  ;;  %v562_v56 = vmax.f32 %v486_v52, 0.0 }
 0x13e   : > { %v491_v57 = vpop.f32.mrf.mxu0 }
 0x13f   : > { %v563_v59 = vmax.f32 %v488_v55, 0.0  ;;  %v592_v63 = vpack.c.bf16 %v562_v56, %v560_v60  ;;  %v492_v3 = vadd.f32 %v491_v57, %v1840_v48 }
 0x140   : > { %v493_v61 = vpop.f32.mrf.mxu0 }
 0x141   : > { %v593_v62 = vpack.c.bf16 %v563_v59, %v561_v58  ;;  %v494_v1 = vadd.f32 %v493_v61, %v1838_v47  ;;  %v564_v10 = vmax.f32 %v492_v3, 0.0 }
 0x142   : > { %v495_v0 = vpop.f32.mrf.mxu0 }
 0x143   : > { %v496_v2 = vadd.f32 %v495_v0, %v1840_v48  ;;  %775 = vmatprep.mubr.bf16.mxu1 %v593_v62  ;;  %v565_v8 = vmax.f32 %v494_v1, 0.0 }
 0x144   : > { %v497_v4 = vpop.f32.mrf.mxu0  ;;  %776 = vmatmul.mubr.bf16.vlgmr.msra.gmra.mxu1 %v592_v63 }
 0x145   : > { %v498_v5 = vadd.f32 %v497_v4, %v1838_v47  ;;  %v566_v6 = vmax.f32 %v496_v2, 0.0 }
 0x146   : > { %v501_v7 = vpop.f32.mrf.mxu0 }
 0x147   : > { %v567_v9 = vmax.f32 %v498_v5, 0.0  ;;  %v594_v13 = vpack.c.bf16 %v566_v6, %v564_v10  ;;  %v502_v17 = vadd.f32 %v501_v7, %v1840_v48 }
 0x148   : > { %v503_v11 = vpop.f32.mrf.mxu0 }
 0x149   : > { %v595_v12 = vpack.c.bf16 %v567_v9, %v565_v8  ;;  %v504_v15 = vadd.f32 %v503_v11, %v1838_v47  ;;  %v568_v24 = vmax.f32 %v502_v17, 0.0 }
 0x14a   : > { %v505_v14 = vpop.f32.mrf.mxu0 }
 0x14b   : > { %v506_v16 = vadd.f32 %v505_v14, %v1840_v48  ;;  %783 = vmatprep.mubr.bf16.mxu1 %v595_v12  ;;  %v569_v22 = vmax.f32 %v504_v15, 0.0 }
 0x14c   : > { %v507_v18 = vpop.f32.mrf.mxu0  ;;  %784 = vmatmul.mubr.bf16.gmra.mxu1 %v594_v13 }
 0x14d   : > { %v508_v19 = vadd.f32 %v507_v18, %v1838_v47  ;;  %v570_v20 = vmax.f32 %v506_v16, 0.0 }
 0x14e   : > { %v511_v21 = vpop.f32.mrf.mxu0 }
 0x14f   : > { %v571_v23 = vmax.f32 %v508_v19, 0.0  ;;  %v596_v27 = vpack.c.bf16 %v570_v20, %v568_v24  ;;  %v512_v31 = vadd.f32 %v511_v21, %v1840_v48 }
 0x150   : > { %v513_v25 = vpop.f32.mrf.mxu0 }
 0x151   : > { %v597_v26 = vpack.c.bf16 %v571_v23, %v569_v22  ;;  %v514_v29 = vadd.f32 %v513_v25, %v1838_v47  ;;  %v572_v38 = vmax.f32 %v512_v31, 0.0 }
 0x152   : > { %v515_v28 = vpop.f32.mrf.mxu0 }
 0x153   : > { %v516_v30 = vadd.f32 %v515_v28, %v1840_v48  ;;  %791 = vmatprep.mubr.bf16.mxu1 %v597_v26  ;;  %v573_v36 = vmax.f32 %v514_v29, 0.0 }
 0x154   : > { %v517_v32 = vpop.f32.mrf.mxu0  ;;  %792 = vmatmul.mubr.bf16.gmra.mxu1 %v596_v27 }
 0x155   : > { %v518_v33 = vadd.f32 %v517_v32, %v1838_v47  ;;  %v574_v34 = vmax.f32 %v516_v30, 0.0 }
 0x156   : > { %v521_v35 = vpop.f32.mrf.mxu0 }
 0x157   : > { %v575_v37 = vmax.f32 %v518_v33, 0.0  ;;  %v598_v41 = vpack.c.bf16 %v574_v34, %v572_v38  ;;  %v522_v45 = vadd.f32 %v521_v35, %v1840_v48 }
 0x158   : > { %v523_v39 = vpop.f32.mrf.mxu0 }
 0x159   : > { %v599_v40 = vpack.c.bf16 %v575_v37, %v573_v36  ;;  %v524_v43 = vadd.f32 %v523_v39, %v1838_v47  ;;  %v576_v54 = vmax.f32 %v522_v45, 0.0  ;;  %v1877_v36 = vld [vmem:[%s2104_s4] ss:$0 sm:$0xff] }
 0x15a   : > { %v525_v42 = vpop.f32.mrf.mxu0 }
 0x15b   : > { %v526_v44 = vadd.f32 %v525_v42, %v1840_v48  ;;  %799 = vmatprep.mubr.bf16.mxu1 %v599_v40  ;;  %v577_v52 = vmax.f32 %v524_v43, 0.0 }
 0x15c   : > { %v527_v46 = vpop.f32.mrf.mxu0  ;;  %800 = vmatmul.mubr.bf16.gmra.mxu1 %v598_v41 }
 0x15d   : > { %v528_v49 = vadd.f32 %v527_v46, %v1838_v47  ;;  %v578_v50 = vmax.f32 %v526_v44, 0.0 }
 0x15e   : > { %v531_v51 = vpop.f32.mrf.mxu0 }
 0x15f   : > { %v579_v53 = vmax.f32 %v528_v49, 0.0  ;;  %v600_v57 = vpack.c.bf16 %v578_v50, %v576_v54  ;;  %v532_v61 = vadd.f32 %v531_v51, %v1840_v48 }
 0x160   : > { %v533_v55 = vpop.f32.mrf.mxu0 }
 0x161   : > { %v601_v56 = vpack.c.bf16 %v579_v53, %v577_v52  ;;  %v534_v59 = vadd.f32 %v533_v55, %v1838_v47  ;;  %v580_v4 = vmax.f32 %v532_v61, 0.0 }
 0x162   : > { %v535_v58 = vpop.f32.mrf.mxu0 }
 0x163   : > { %v536_v60 = vadd.f32 %v535_v58, %v1840_v48  ;;  %807 = vmatprep.mubr.bf16.mxu1 %v601_v56  ;;  %v581_v2 = vmax.f32 %v534_v59, 0.0 }
 0x164   : > { %v537_v62 = vpop.f32.mrf.mxu0  ;;  %808 = vmatmul.mubr.bf16.gmra.mxu1 %v600_v57 }
 0x165   : > { %v538_v63 = vadd.f32 %v537_v62, %v1838_v47  ;;  %v582_v0 = vmax.f32 %v536_v60, 0.0 }
 0x166   : > { %v541_v1 = vpop.f32.mrf.mxu0 }
 0x167   : > { %v583_v3 = vmax.f32 %v538_v63, 0.0  ;;  %v602_v7 = vpack.c.bf16 %v582_v0, %v580_v4  ;;  %v542_v11 = vadd.f32 %v541_v1, %v1840_v48 }
 0x168   : > { %v543_v5 = vpop.f32.mrf.mxu0 }
 0x169   : > { %v603_v6 = vpack.c.bf16 %v583_v3, %v581_v2  ;;  %v544_v9 = vadd.f32 %v543_v5, %v1838_v47  ;;  %v584_v18 = vmax.f32 %v542_v11, 0.0 }
 0x16a   : > { %v545_v8 = vpop.f32.mrf.mxu0 }
 0x16b   : > { %v546_v10 = vadd.f32 %v545_v8, %v1840_v48  ;;  %815 = vmatprep.mubr.bf16.mxu1 %v603_v6  ;;  %v585_v16 = vmax.f32 %v544_v9, 0.0 }
 0x16c   : > { %v547_v12 = vpop.f32.mrf.mxu0  ;;  %816 = vmatmul.mubr.bf16.gmra.mxu1 %v602_v7 }
 0x16d   : > { %v548_v13 = vadd.f32 %v547_v12, %v1838_v47  ;;  %v586_v14 = vmax.f32 %v546_v10, 0.0 }
 0x16e   : > { %v551_v15 = vpop.f32.mrf.mxu0 }
 0x16f   : > { %v587_v17 = vmax.f32 %v548_v13, 0.0  ;;  %v604_v21 = vpack.c.bf16 %v586_v14, %v584_v18  ;;  %v552_v25 = vadd.f32 %v551_v15, %v1840_v48 }
 0x170   : > { %v553_v19 = vpop.f32.mrf.mxu0 }
 0x171   : > { %v605_v20 = vpack.c.bf16 %v587_v17, %v585_v16  ;;  %v554_v23 = vadd.f32 %v553_v19, %v1838_v47  ;;  %v588_v31 = vmax.f32 %v552_v25, 0.0 }
 0x172   : > { %v555_v22 = vpop.f32.mrf.mxu0 }
 0x173   : > { %v556_v24 = vadd.f32 %v555_v22, %v1840_v48  ;;  %823 = vmatprep.mubr.bf16.mxu1 %v605_v20  ;;  %v589_v29 = vmax.f32 %v554_v23, 0.0 }
 0x174   : > { %v557_v26 = vpop.f32.mrf.mxu0  ;;  %824 = vmatmul.mubr.bf16.gmra.mxu1 %v604_v21 }
 0x175   : > { %v558_v27 = vadd.f32 %v557_v26, %v1838_v47  ;;  %v590_v28 = vmax.f32 %v556_v24, 0.0 }
 0x177   : > { %v591_v30 = vmax.f32 %v558_v27, 0.0  ;;  %v606_v33 = vpack.c.bf16 %v590_v28, %v588_v31 }
 0x179   : > { %v607_v32 = vpack.c.bf16 %v591_v30, %v589_v29 }
 0x17b   : > { %831 = vmatprep.mubr.bf16.mxu1 %v607_v32 }
 0x17c   : > { %832 = vmatmul.mubr.bf16.gmra.mxu1 %v606_v33 }
 0x204   : > { %v1247_v34 = vpop.f32.mrf.mxu1 }
 0x206   : > { %v1248_v35 = vpop.f32.mrf.mxu1 }
 0x207   : > { %v1249_v48 = vadd.f32 %v1248_v35, %v1247_v34 }
 0x208   : > { %v1250_v37 = vpop.f32.mrf.mxu1 }
 0x209   : > { %v1880_v38 = vadd.f32 %v1249_v48, %v1877_v36 }
 0x20a   : > { %v1251_v47 = vpop.f32.mrf.mxu1 }
 0x20b   : > { %v1252_v39 = vadd.f32 %v1251_v47, %v1250_v37  ;;  %v840_v40 = vmul.f32 %v1880_v38, %v1880_v38 }
 0x20c   : > { %v1253_v41 = vpop.f32.mrf.mxu1 }
 0x20d   : > { %v1885_v42 = vadd.f32 %v1252_v39, %v1877_v36  ;;  %856 = vadd.xlane.f32.xlu0 %v840_v40 }
 0x20e   : > { %v1254_v43 = vpop.f32.mrf.mxu1 }
 0x20f   : > { %v1255_v44 = vadd.f32 %v1254_v43, %v1253_v41  ;;  %v841_v45 = vmul.f32 %v1885_v42, %v1885_v42 }
 0x210   : > { %v1256_v46 = vpop.f32.mrf.mxu1 }
 0x211   : > { %858 = vadd.xlane.f32.xlu0 %v841_v45  ;;  %v1890_v49 = vadd.f32 %v1255_v44, %v1877_v36 }
 0x212   : > { %v1257_v50 = vpop.f32.mrf.mxu1 }
 0x213   : > { %v1258_v51 = vadd.f32 %v1257_v50, %v1256_v46  ;;  %v842_v52 = vmul.f32 %v1890_v49, %v1890_v49 }
 0x214   : > { %v1259_v53 = vpop.f32.mrf.mxu1 }
 0x215   : > { %v1895_v54 = vadd.f32 %v1258_v51, %v1877_v36  ;;  %860 = vadd.xlane.f32.xlu1 %v842_v52 }
 0x216   : > { %v1260_v55 = vpop.f32.mrf.mxu1 }
 0x217   : > { %v1261_v56 = vadd.f32 %v1260_v55, %v1259_v53  ;;  %v843_v57 = vmul.f32 %v1895_v54, %v1895_v54 }
 0x218   : > { %v1262_v58 = vpop.f32.mrf.mxu1 }
 0x219   : > { %v1900_v59 = vadd.f32 %v1261_v56, %v1877_v36  ;;  %862 = vadd.xlane.f32.xlu1 %v843_v57 }
 0x21a   : > { %v1263_v60 = vpop.f32.mrf.mxu1 }
 0x21b   : > { %v1264_v61 = vadd.f32 %v1263_v60, %v1262_v58  ;;  %v844_v62 = vmul.f32 %v1900_v59, %v1900_v59 }
 0x21c   : > { %v1265_v63 = vpop.f32.mrf.mxu1 }
 0x21d   : > { %v1905_v0 = vadd.f32 %v1264_v61, %v1877_v36  ;;  %864 = vadd.xlane.f32.xlu0 %v844_v62 }
 0x21e   : > { %v1266_v1 = vpop.f32.mrf.mxu1 }
 0x21f   : > { %v1267_v2 = vadd.f32 %v1266_v1, %v1265_v63  ;;  %v845_v3 = vmul.f32 %v1905_v0, %v1905_v0 }
 0x220   : > { %v1268_v4 = vpop.f32.mrf.mxu1 }
 0x221   : > { %v1910_v5 = vadd.f32 %v1267_v2, %v1877_v36  ;;  %866 = vadd.xlane.f32.xlu1 %v845_v3 }
 0x222   : > { %v1269_v6 = vpop.f32.mrf.mxu1 }
 0x223   : > { %v1270_v7 = vadd.f32 %v1269_v6, %v1268_v4  ;;  %v846_v8 = vmul.f32 %v1910_v5, %v1910_v5 }
 0x224   : > { %v1271_v9 = vpop.f32.mrf.mxu1 }
 0x225   : > { %v1915_v10 = vadd.f32 %v1270_v7, %v1877_v36  ;;  %868 = vadd.xlane.f32.xlu0 %v846_v8 }
 0x226   : > { %v1272_v11 = vpop.f32.mrf.mxu1 }
 0x227   : > { %v1273_v12 = vadd.f32 %v1272_v11, %v1271_v9  ;;  %v847_v13 = vmul.f32 %v1915_v10, %v1915_v10 }
 0x228   : > { %v1274_v14 = vpop.f32.mrf.mxu1 }
 0x229   : > { %v1920_v15 = vadd.f32 %v1273_v12, %v1877_v36  ;;  %870 = vadd.xlane.f32.xlu1 %v847_v13 }
 0x22a   : > { %v1275_v16 = vpop.f32.mrf.mxu1 }
 0x22b   : > { %v1276_v17 = vadd.f32 %v1275_v16, %v1274_v14  ;;  %v848_v18 = vmul.f32 %v1920_v15, %v1920_v15 }
 0x22c   : > { %v1277_v19 = vpop.f32.mrf.mxu1 }
 0x22d   : > { %v1925_v20 = vadd.f32 %v1276_v17, %v1877_v36  ;;  %872 = vadd.xlane.f32.xlu0 %v848_v18 }
 0x22e   : > { %v1278_v21 = vpop.f32.mrf.mxu1 }
 0x22f   : > { %v1279_v22 = vadd.f32 %v1278_v21, %v1277_v19  ;;  %v849_v23 = vmul.f32 %v1925_v20, %v1925_v20 }
 0x230   : > { %v1280_v24 = vpop.f32.mrf.mxu1 }
 0x231   : > { %v1930_v25 = vadd.f32 %v1279_v22, %v1877_v36  ;;  %874 = vadd.xlane.f32.xlu1 %v849_v23 }
 0x232   : > { %v1281_v26 = vpop.f32.mrf.mxu1 }
 0x233   : > { %v1282_v27 = vadd.f32 %v1281_v26, %v1280_v24  ;;  %v850_v28 = vmul.f32 %v1930_v25, %v1930_v25 }
 0x234   : > { %v1283_v29 = vpop.f32.mrf.mxu1 }
 0x235   : > { %v1935_v30 = vadd.f32 %v1282_v27, %v1877_v36  ;;  %876 = vadd.xlane.f32.xlu0 %v850_v28 }
 0x236   : > { %v1284_v31 = vpop.f32.mrf.mxu1 }
 0x237   : > { %v1285_v32 = vadd.f32 %v1284_v31, %v1283_v29  ;;  %v851_v33 = vmul.f32 %v1935_v30, %v1935_v30 }
 0x238   : > { %v1286_v34 = vpop.f32.mrf.mxu1 }
 0x239   : > { %v1940_v35 = vadd.f32 %v1285_v32, %v1877_v36  ;;  %878 = vadd.xlane.f32.xlu1 %v851_v33 }
 0x23a   : > { %v1287_v48 = vpop.f32.mrf.mxu1 }
 0x23b   : > { %v1288_v37 = vadd.f32 %v1287_v48, %v1286_v34  ;;  %v852_v47 = vmul.f32 %v1940_v35, %v1940_v35 }
 0x23c   : > { %v1289_v39 = vpop.f32.mrf.mxu1 }
 0x23d   : > { %v1945_v40 = vadd.f32 %v1288_v37, %v1877_v36  ;;  %880 = vadd.xlane.f32.xlu0 %v852_v47 }
 0x23e   : > { %v1290_v41 = vpop.f32.mrf.mxu1 }
 0x23f   : > { %v1291_v43 = vadd.f32 %v1290_v41, %v1289_v39  ;;  %v853_v44 = vmul.f32 %v1945_v40, %v1945_v40 }
 0x240   : > { %v1292_v45 = vpop.f32.mrf.mxu1 }
 0x241   : > { %v1950_v46 = vadd.f32 %v1291_v43, %v1877_v36  ;;  %882 = vadd.xlane.f32.xlu1 %v853_v44 }
 0x242   : > { %v1293_v50 = vpop.f32.mrf.mxu1 }
 0x243   : > { %v1294_v51 = vadd.f32 %v1293_v50, %v1292_v45  ;;  %v854_v52 = vmul.f32 %v1950_v46, %v1950_v46 }
 0x245   : > { %v1955_v53 = vadd.f32 %v1294_v51, %v1877_v36  ;;  %884 = vadd.xlane.f32.xlu0 %v854_v52 }
 0x247   : > { %v855_v55 = vmul.f32 %v1955_v53, %v1955_v53 }
 0x249   : > { %886 = vadd.xlane.f32.xlu1 %v855_v55 }
 0x296   : > { %v857_v56 = vpop.xlane.xlu0 %856 }
 0x297   : > { %1417 = vrsqrt.f32 %v857_v56  ;;  %vm890_vm0 = vcmp.eq.f32.partialorder %v857_v56, inf  ;;  %v893_v63 = vand.u32 2147483648, %v857_v56  ;;  %vm892_vm1 = vcmp.eq.f32.partialorder %v857_v56, 0.0 }
 0x29a   : > { %v859_v57 = vpop.xlane.xlu0 %858 }
 0x29b   : > { %1419 = vrsqrt.f32 %v859_v57  ;;  %vm897_vm2 = vcmp.eq.f32.partialorder %v859_v57, inf  ;;  %v900_v7 = vand.u32 2147483648, %v859_v57  ;;  %vm899_vm3 = vcmp.eq.f32.partialorder %v859_v57, 0.0 }
 0x29e   : > { %v861_v58 = vpop.xlane.xlu1 %860 }
 0x29f   : > { %1421 = vrsqrt.f32 %v861_v58  ;;  %vm904_vm4 = vcmp.eq.f32.partialorder %v861_v58, inf  ;;  %v907_v16 = vand.u32 2147483648, %v861_v58  ;;  %vm906_vm5 = vcmp.eq.f32.partialorder %v861_v58, 0.0 }
 0x2a2   : > { %v863_v60 = vpop.xlane.xlu1 %862 }
 0x2a3   : > { %1423 = vrsqrt.f32 %v863_v60  ;;  %vm911_vm6 = vcmp.eq.f32.partialorder %v863_v60, inf  ;;  %v914_v24 = vand.u32 2147483648, %v863_v60  ;;  %vm913_vm7 = vcmp.eq.f32.partialorder %v863_v60, 0.0 }
 0x2a4   : > { %v1418_v61 = vpop.eup %1417 }
 0x2a5   : > { %v889_v62 = vmul.f32 %v1418_v61, %v857_v56 }
 0x2a6   : > { %v865_v1 = vpop.xlane.xlu0 %864 }
 0x2a7   : > { %v891_v36 = vsel %vm890_vm0, %v857_v56, %v889_v62  ;;  %1425 = vrsqrt.f32 %v865_v1  ;;  %vm918_vm8 = vcmp.eq.f32.partialorder %v865_v1, inf  ;;  %v921_v33 = vand.u32 2147483648, %v865_v1 }
 0x2a8   : > { %v1420_v2 = vpop.eup %1419  ;;  %v894_v3 = vsel %vm892_vm1, %v893_v63, %v891_v36  ;;  %vm920_vm9 = vcmp.eq.f32.partialorder %v865_v1, 0.0 }
 0x2a9   : > { %v1000_v4 = vmax.f32 %v894_v3, 1e-12  ;;  %v896_v6 = vmul.f32 %v1420_v2, %v859_v57 }
 0x2aa   : > { %v867_v8 = vpop.xlane.xlu1 %866 }
 0x2ab   : > { %1427 = vrcp.f32 %v1000_v4  ;;  %v898_v9 = vsel %vm897_vm2, %v859_v57, %v896_v6  ;;  %vm925_vm10 = vcmp.eq.f32.partialorder %v867_v8, inf  ;;  %v928_v50 = vand.u32 2147483648, %v867_v8 }
 0x2ac   : > { %v1422_v11 = vpop.eup %1421  ;;  %v901_v12 = vsel %vm899_vm3, %v900_v7, %v898_v9  ;;  %1429 = vrsqrt.f32 %v867_v8  ;;  %vm927_vm11 = vcmp.eq.f32.partialorder %v867_v8, 0.0 }
 0x2ad   : > { %v1001_v13 = vmax.f32 %v901_v12, 1e-12  ;;  %v903_v14 = vmul.f32 %v1422_v11, %v861_v58 }
 0x2ae   : > { %v869_v17 = vpop.xlane.xlu0 %868 }
 0x2af   : > { %1431 = vrcp.f32 %v1001_v13  ;;  %v905_v18 = vsel %vm904_vm4, %v861_v58, %v903_v14  ;;  %vm932_vm12 = vcmp.eq.f32.partialorder %v869_v17, inf  ;;  %v935_v61 = vand.u32 2147483648, %v869_v17 }
 0x2b0   : > { %v1424_v19 = vpop.eup %1423  ;;  %v908_v21 = vsel %vm906_vm5, %v907_v16, %v905_v18  ;;  %1433 = vrsqrt.f32 %v869_v17  ;;  %vm934_vm13 = vcmp.eq.f32.partialorder %v869_v17, 0.0 }
 0x2b1   : > { %v1002_v22 = vmax.f32 %v908_v21, 1e-12  ;;  %v910_v23 = vmul.f32 %v1424_v19, %v863_v60 }
 0x2b2   : > { %v1959_v26 = vpop.xlane.xlu1 %870 }
 0x2b3   : > { %1435 = vrcp.f32 %v1002_v22  ;;  %v912_v27 = vsel %vm911_vm6, %v863_v60, %v910_v23  ;;  %vm939_vm14 = vcmp.eq.f32.partialorder %v1959_v26, inf  ;;  %v942_v6 = vand.u32 2147483648, %v1959_v26 }
 0x2b4   : > { %v1426_v28 = vpop.eup %1425  ;;  %v915_v29 = vsel %vm913_vm7, %v914_v24, %v912_v27  ;;  %1437 = vrsqrt.f32 %v1959_v26  ;;  %vm941_vm15 = vcmp.eq.f32.partialorder %v1959_v26, 0.0 }
 0x2b5   : > { %v1003_v31 = vmax.f32 %v915_v29, 1e-12  ;;  %v917_v32 = vmul.f32 %v1426_v28, %v865_v1 }
 0x2b6   : > { %v1963_v34 = vpop.xlane.xlu0 %872 }
 0x2b7   : > { %1439 = vrcp.f32 %v1003_v31  ;;  %v919_v48 = vsel %vm918_vm8, %v865_v1, %v917_v32  ;;  %vm946_vm0 = vcmp.eq.f32.partialorder %v1963_v34, inf  ;;  %v949_v16 = vand.u32 2147483648, %v1963_v34 }
 0x2b8   : > { %v1428_v37 = vpop.eup %1427  ;;  %v922_v47 = vsel %vm920_vm9, %v921_v33, %v919_v48  ;;  %1441 = vrsqrt.f32 %v1963_v34  ;;  %vm948_vm1 = vcmp.eq.f32.partialorder %v1963_v34, 0.0 }
 0x2b9   : > { %v1430_v39 = vpop.eup %1429  ;;  %v1032_v41 = vmul.f32 %v1428_v37, %v1880_v38  ;;  %v1004_v43 = vmax.f32 %v922_v47, 1e-12 }
 0x2ba   : > { %v924_v44 = vmul.f32 %v1430_v39, %v867_v8  ;;  %v1967_v45 = vpop.xlane.xlu1 %874 }
 0x2bb   : > { %1048 = vst [vmem:[%s1969_s15] sm:$0xff] %v1032_v41  ;;  %1443 = vrcp.f32 %v1004_v43  ;;  %vm953_vm2 = vcmp.eq.f32.partialorder %v1967_v45, inf  ;;  %vm955_vm3 = vcmp.eq.f32.partialorder %v1967_v45, 0.0 }
 0x2bc   : > { %v1432_v51 = vpop.eup %1431  ;;  %v926_v52 = vsel %vm925_vm10, %v867_v8, %v924_v44  ;;  %1445 = vrsqrt.f32 %v1967_v45 }
 0x2bd   : > { %v1434_v55 = vpop.eup %1433  ;;  %v1033_v38 = vmul.f32 %v1432_v51, %v1885_v42  ;;  %v929_v56 = vsel %vm927_vm11, %v928_v50, %v926_v52 }
 0x2be   : > { %v1005_v57 = vmax.f32 %v929_v56, 1e-12  ;;  %v931_v58 = vmul.f32 %v1434_v55, %v869_v17  ;;  %v1974_v60 = vpop.xlane.xlu0 %876 }
 0x2bf   : > { %1049 = vst [vmem:[%s1969_s15 + $0x8] sm:$0xff] %v1033_v38  ;;  %1447 = vrsqrt.f32 %v1974_v60  ;;  %vm960_vm4 = vcmp.eq.f32.partialorder %v1974_v60, inf  ;;  %vm962_vm5 = vcmp.eq.f32.partialorder %v1974_v60, 0.0 }
 0x2c0   : > { %v1436_v62 = vpop.eup %1435  ;;  %1449 = vrcp.f32 %v1005_v57  ;;  %v933_v63 = vsel %vm932_vm12, %v869_v17, %v931_v58 }
 0x2c1   : > { %v1438_v1 = vpop.eup %1437  ;;  %v1034_v36 = vmul.f32 %v1436_v62, %v1890_v49  ;;  %v936_v2 = vsel %vm934_vm13, %v935_v61, %v933_v63 }
 0x2c2   : > { %v1006_v42 = vmax.f32 %v936_v2, 1e-12  ;;  %v938_v3 = vmul.f32 %v1438_v1, %v1959_v26  ;;  %v1980_v4 = vpop.xlane.xlu1 %878 }
 0x2c3   : > { %1050 = vst [vmem:[%s1969_s15 + $0x10] sm:$0xff] %v1034_v36  ;;  %1451 = vrsqrt.f32 %v1980_v4  ;;  %vm967_vm6 = vcmp.eq.f32.partialorder %v1980_v4, inf  ;;  %vm969_vm7 = vcmp.eq.f32.partialorder %v1980_v4, 0.0 }
 0x2c4   : > { %v1440_v7 = vpop.eup %1439  ;;  %1453 = vrcp.f32 %v1006_v42  ;;  %v940_v8 = vsel %vm939_vm14, %v1959_v26, %v938_v3  ;;  %v956_v26 = vand.u32 2147483648, %v1967_v45 }
 0x2c5   : > { %v1442_v49 = vpop.eup %1441  ;;  %v1035_v9 = vmul.f32 %v1440_v7, %v1895_v54  ;;  %v943_v11 = vsel %vm941_vm15, %v942_v6, %v940_v8 }
 0x2c6   : > { %v1007_v12 = vmax.f32 %v943_v11, 1e-12  ;;  %v945_v13 = vmul.f32 %v1442_v49, %v1963_v34  ;;  %v1990_v14 = vpop.xlane.xlu0 %880 }
 0x2c7   : > { %1051 = vst [vmem:[%s1969_s15 + $0x18] sm:$0xff] %v1035_v9  ;;  %1455 = vrsqrt.f32 %v1990_v14  ;;  %vm974_vm8 = vcmp.eq.f32.partialorder %v1990_v14, inf  ;;  %v977_v58 = vand.u32 2147483648, %v1990_v14  ;;  %vm976_vm9 = vcmp.eq.f32.partialorder %v1990_v14, 0.0 }
 0x2c8   : > { %v1444_v17 = vpop.eup %1443  ;;  %1457 = vrcp.f32 %v1007_v12  ;;  %v947_v18 = vsel %vm946_vm0, %v1963_v34, %v945_v13  ;;  %v963_v34 = vand.u32 2147483648, %v1974_v60 }
 0x2c9   : > { %v1446_v54 = vpop.eup %1445  ;;  %v1036_v19 = vmul.f32 %v1444_v17, %v1900_v59  ;;  %v950_v21 = vsel %vm948_vm1, %v949_v16, %v947_v18 }
 0x2ca   : > { %v1008_v22 = vmax.f32 %v950_v21, 1e-12  ;;  %v952_v23 = vmul.f32 %v1446_v54, %v1967_v45  ;;  %v2000_v24 = vpop.xlane.xlu1 %882 }
 0x2cb   : > { %1052 = vst [vmem:[%s1969_s15 + $0x20] sm:$0xff] %v1036_v19  ;;  %1459 = vrsqrt.f32 %v2000_v24  ;;  %vm981_vm10 = vcmp.eq.f32.partialorder %v2000_v24, inf  ;;  %vm983_vm11 = vcmp.eq.f32.partialorder %v2000_v24, 0.0 }
 0x2cc   : > { %v1448_v27 = vpop.eup %1447  ;;  %1461 = vrcp.f32 %v1008_v22  ;;  %v954_v28 = vsel %vm953_vm2, %v1967_v45, %v952_v23  ;;  %v970_v45 = vand.u32 2147483648, %v1980_v4 }
 0x2cd   : > { %v1450_v59 = vpop.eup %1449  ;;  %v957_v29 = vsel %vm955_vm3, %v956_v26, %v954_v28  ;;  %v959_v31 = vmul.f32 %v1448_v27, %v1974_v60 }
 0x2ce   : > { %v1037_v32 = vmul.f32 %v1450_v59, %v1905_v0  ;;  %v1009_v33 = vmax.f32 %v957_v29, 1e-12  ;;  %v885_v48 = vpop.xlane.xlu0 %884 }
 0x2cf   : > { %v961_v37 = vsel %vm960_vm4, %v1974_v60, %v959_v31  ;;  %1463 = vrsqrt.f32 %v885_v48  ;;  %vm988_vm12 = vcmp.eq.f32.partialorder %v885_v48, inf  ;;  %vm990_vm13 = vcmp.eq.f32.partialorder %v885_v48, 0.0 }
 0x2d0   : > { %v1452_v47 = vpop.eup %1451  ;;  %1053 = vst [vmem:[%s1969_s15 + $0x28] sm:$0xff] %v1037_v32  ;;  %1465 = vrcp.f32 %v1009_v33  ;;  %v964_v39 = vsel %vm962_vm5, %v963_v34, %v961_v37 }
 0x2d1   : > { %v1454_v41 = vpop.eup %1453  ;;  %v1010_v43 = vmax.f32 %v964_v39, 1e-12  ;;  %v966_v0 = vmul.f32 %v1452_v47, %v1980_v4 }
 0x2d2   : > { %v1038_v44 = vmul.f32 %v1454_v41, %v1910_v5  ;;  %v887_v50 = vpop.xlane.xlu1 %886 }
 0x2d3   : > { %1467 = vrcp.f32 %v1010_v43  ;;  %v968_v51 = vsel %vm967_vm6, %v1980_v4, %v966_v0  ;;  %vm995_vm14 = vcmp.eq.f32.partialorder %v887_v50, inf  ;;  %vm997_vm15 = vcmp.eq.f32.partialorder %v887_v50, 0.0 }
 0x2d4   : > { %v1456_v52 = vpop.eup %1455  ;;  %1054 = vst [vmem:[%s1969_s15 + $0x30] sm:$0xff] %v1038_v44  ;;  %v971_v55 = vsel %vm969_vm7, %v970_v45, %v968_v51  ;;  %1469 = vrsqrt.f32 %v887_v50 }
 0x2d5   : > { %v1458_v38 = vpop.eup %1457  ;;  %v1011_v56 = vmax.f32 %v971_v55, 1e-12  ;;  %v973_v57 = vmul.f32 %v1456_v52, %v1990_v14 }
 0x2d6   : > { %v1039_v5 = vmul.f32 %v1458_v38, %v1915_v10  ;;  %v984_v10 = vand.u32 2147483648, %v2000_v24 }
 0x2d7   : > { %1471 = vrcp.f32 %v1011_v56  ;;  %v975_v60 = vsel %vm974_vm8, %v1990_v14, %v973_v57 }
 0x2d8   : > { %v1460_v61 = vpop.eup %1459  ;;  %1055 = vst [vmem:[%s1969_s15 + $0x38] sm:$0xff] %v1039_v5  ;;  %v978_v62 = vsel %vm976_vm9, %v977_v58, %v975_v60 }
 0x2d9   : > { %v1462_v63 = vpop.eup %1461  ;;  %v1012_v1 = vmax.f32 %v978_v62, 1e-12  ;;  %v980_v36 = vmul.f32 %v1460_v61, %v2000_v24 }
 0x2da   : > { %v1040_v2 = vmul.f32 %v1462_v63, %v1920_v15  ;;  %v991_v15 = vand.u32 2147483648, %v885_v48 }
 0x2db   : > { %1473 = vrcp.f32 %v1012_v1  ;;  %v982_v42 = vsel %vm981_vm10, %v2000_v24, %v980_v36 }
 0x2dc   : > { %v1464_v3 = vpop.eup %1463  ;;  %1056 = vst [vmem:[%s1969_s15 + $0x40] sm:$0xff] %v1040_v2  ;;  %v985_v4 = vsel %vm983_vm11, %v984_v10, %v982_v42 }
 0x2dd   : > { %v1466_v6 = vpop.eup %1465  ;;  %v1013_v7 = vmax.f32 %v985_v4, 1e-12  ;;  %v987_v8 = vmul.f32 %v1464_v3, %v885_v48 }
 0x2de   : > { %v1041_v49 = vmul.f32 %v1466_v6, %v1925_v20  ;;  %v998_v20 = vand.u32 2147483648, %v887_v50 }
 0x2df   : > { %1475 = vrcp.f32 %v1013_v7  ;;  %v989_v9 = vsel %vm988_vm12, %v885_v48, %v987_v8 }
 0x2e0   : > { %v1468_v11 = vpop.eup %1467  ;;  %1057 = vst [vmem:[%s1969_s15 + $0x48] sm:$0xff] %v1041_v49  ;;  %v992_v12 = vsel %vm990_vm13, %v991_v15, %v989_v9 }
 0x2e1   : > { %v1470_v13 = vpop.eup %1469  ;;  %v1042_v14 = vmul.f32 %v1468_v11, %v1930_v25  ;;  %v1014_v16 = vmax.f32 %v992_v12, 1e-12 }
 0x2e2   : > { %v994_v17 = vmul.f32 %v1470_v13, %v887_v50 }
 0x2e3   : > { %1058 = vst [vmem:[%s1969_s15 + $0x50] sm:$0xff] %v1042_v14  ;;  %1477 = vrcp.f32 %v1014_v16 }
 0x2e4   : > { %v1472_v18 = vpop.eup %1471  ;;  %v996_v54 = vsel %vm995_vm14, %v887_v50, %v994_v17 }
 0x2e5   : > { %v1043_v19 = vmul.f32 %v1472_v18, %v1935_v30  ;;  %v999_v21 = vsel %vm997_vm15, %v998_v20, %v996_v54 }
 0x2e6   : > { %v1015_v22 = vmax.f32 %v999_v21, 1e-12 }
 0x2e7   : > { %1059 = vst [vmem:[%s1969_s15 + $0x58] sm:$0xff] %v1043_v19 }
 0x2e8   : > { %v1474_v25 = vpop.eup %1473  ;;  %1479 = vrcp.f32 %v1015_v22 }
 0x2e9   : > { %v1044_v23 = vmul.f32 %v1474_v25, %v1940_v35 }
 0x2eb   : > { %1060 = vst [vmem:[%s1969_s15 + $0x60] sm:$0xff] %v1044_v23 }
 0x2ec   : > { %v1476_v24 = vpop.eup %1475 }
 0x2ed   : > { %v1045_v26 = vmul.f32 %v1476_v24, %v1945_v40 }
 0x2ef   : > { %1061 = vst [vmem:[%s1969_s15 + $0x68] sm:$0xff] %v1045_v26 }
 0x2f0   : > { %v1478_v27 = vpop.eup %1477 }
 0x2f1   : > { %v1046_v28 = vmul.f32 %v1478_v27, %v1950_v46 }
 0x2f3   : > { %1062 = vst [vmem:[%s1969_s15 + $0x70] sm:$0xff] %v1046_v28 }
 0x2f5   : > { %v1480_v30 = vpop.eup %1479 }
 0x2f6   : > { %v1047_v35 = vmul.f32 %v1480_v30, %v1955_v53 }
 0x2f8   : > { %1063 = vst [vmem:[%s1969_s15 + $0x78] sm:$0xff] %v1047_v35 }
 0x2f9   : > { %1574 = shalt.err (!%p1571_p9)
}
 0x2fa   : > { %s1575_s24 = scalar_lea.hbm %s2053_s27, 2048  ;;  %s1579_s10 = scalar_lea.hbm %s2105_s5, 4096 }
 0x2fb   : > { %p1576_p13 = scmp.ne.s32.totalorder %s2053_s27, %s1575_s24  ;;  %p1580_p4 = scmp.lt.s32.totalorder %s2053_s27, %s2105_s5 }
 0x2fc   : > { %p1581_p8 = scmp.lt.s32.totalorder %s1579_s10, %s1575_s24 }
 0x2fd   : > { %p1577_p5 = pnand %p1576_p13, %p2123_p10 }
 0x2fe   : > { %p1582_p7 = por %p1581_p8, %p1580_p4 }
 0x2ff   : > { %p1578_p0 = pneg %p1577_p5 }
 0x301   : > { %p1583_p11 = pnand %p1582_p7, %p1578_p0 }
 0x303   : > { %1586 = shalt.err (!%p1583_p11)
}
 0x304   : > { %s1640_s16 = smov 128   ;;  %s1641_s30 = smov 8  }
 0x305   : > { %1305 = dma.vmem_to_hbm [thread:$0]  (%p2123_p10), %s2055_s9, 2048, %s2053_s27, %s1065_s23, %s1640_s16, %s1640_s16, %s1641_s30  }
 0x306 PF: > { %s1093_s11 = sand.u32 1, %s1617_s18   ;;  %p2124_p1 = scmp.ne.s32.totalorder %s2112_s25, 0 }
 0x307   : > { %p2125_p2 = scmp.ge.s32.totalorder %s1629_s21, 2  ;;  %s1094_s13 = scalar_lea.sflag [#allocation4], %s1093_s11 }
 0x309   : > { %p1319_p6 = pnand %p2125_p2, %p2124_p1 }
 0x30b   : > { %p1320_p12 = pneg %p1319_p6 }
 0x30d   : > { %1612 = dma.done.wait (%p1320_p12), %s1094_s13, 2048  }
 0x30e   : > { %1614 = vsyncadd (%p1320_p12), %s1094_s13, 4294965248  ;;  %p19_p3 = scmp.ge.s32.totalorder %s1747_s17, 4   ;;  %s2126_s18 = smov %s1621_s19 }
 0x30f   : > { %s2127_s19 = smov %s1625_s20  ;;  %s2128_s20 = smov %s1756_s28 }
 0x310   : > { %s2129_s21 = smov %s1747_s17  ;;  %21 = sbr.rel (!%p19_p3) target bundleno = 6 (0x6), region = 93 }
 0x315   :  { %1099 = vsyncpa [#allocation3], 1 }
 0x316   :  { %1101 = vsyncpa [#allocation3 + $0x1], 1 }
 0x317   :  { %1102 = vsyncpa [#allocation6], 1 }
 0x318   :  { %1103 = vsyncpa [#allocation4], 1 }
 0x319   :  { %1105 = vsyncpa [#allocation4 + $0x1], 1 }

</bundles_post_ra>
